<compile_context>
chip_gen: v6e
topology: v6e:2x2x1
jax: 0.10.0
libtpu: 0.0.40
codegen_flags: <defaults>
</compile_context>

<pallas_src>
import functools

import jax
import jax.numpy as jnp
from jax.experimental import pallas as pl
from jax.experimental.pallas import tpu as pltpu

BINS = 10
LOSS_WEIGHT = 1.0
_ACC_LANES = 128          # per-bin accumulators live in lanes [0, BINS) of one row


def _round_up(x, m):
    return (x + m - 1) // m * m


def _ghmc_kernel(*refs, n_valid, has_lw):
    """refs = (pred_ref, tgt_ref[, lw_ref], out_ref, bce_acc, cnt_acc)."""
    if has_lw:
        pred_ref, tgt_ref, lw_ref, out_ref, bce_acc, cnt_acc = refs
    else:
        pred_ref, tgt_ref, out_ref, bce_acc, cnt_acc = refs
        lw_ref = None

    pid = pl.program_id(0)

    # Zero the persistent per-bin accumulators on the first tile.
    @pl.when(pid == 0)
    def _init():
        bce_acc[...] = jnp.zeros_like(bce_acc)
        cnt_acc[...] = jnp.zeros_like(cnt_acc)

    x = pred_ref[...].astype(jnp.float32)        # (C, T) logits, N on lanes
    tgt = tgt_ref[...]                           # (1, T) int32 class ids
    c, t = x.shape

    # One-hot expand along sublanes: row r <-> "class == r"
    # (torch.zeros(N, 5).scatter_(1, target.view(-1, 1), 1), transposed).
    row_id = jax.lax.broadcasted_iota(jnp.int32, (c, t), 0)
    tgt_onehot = (row_id == tgt).astype(jnp.float32)

    p = jax.nn.sigmoid(x)                        # EUP
    g = jnp.abs(p - tgt_onehot)                  # gradient norm in [0, 1]

    if has_lw:
        # label_weight > 0 is the validity mask; padded columns carry lw == 0.
        valid = lw_ref[...].astype(jnp.float32) > 0.0
    else:
        # Fast path (label_weight=None == all ones): only mask padded columns.
        col_id = jax.lax.broadcasted_iota(jnp.int32, (c, t), 1) + pid * t
        valid = col_id < n_valid

    # Stable BCE-with-logits, reusing the sigmoid for the log term:
    #   log1p(exp(-|x|)) == -log(sigmoid(|x|)) == -log(where(x >= 0, p, 1 - p))
    p_abs = jnp.where(x >= 0.0, p, 1.0 - p)      # in [0.5, 1] -> log is safe
    per_elem = jnp.maximum(x, 0.0) - x * tgt_onehot - jnp.log(p_abs)

    # Uniform edges -> bin = clamp(floor(g * BINS), 0, BINS-1); g == 1.0 lands
    # in the last bin, matching the torch buffer's last edge of 1 + 1e-6.
    bin_idx = jnp.clip((g * jnp.float32(BINS)).astype(jnp.int32), 0, BINS - 1)
    bin_idx = jnp.where(valid, bin_idx, jnp.int32(BINS))   # sentinel = invalid

    # Per-bin masked partial sums for this tile, accumulated into lane b of the
    # persistent (1, 128) VMEM accumulators (counts in f32: exact to 2^24/bin).
    lane_id = jax.lax.broadcasted_iota(jnp.int32, (1, _ACC_LANES), 1)
    bce_row = bce_acc[...]
    cnt_row = cnt_acc[...]
    for b in range(BINS):                         # static unrolled loop
        m = bin_idx == b
        s_bce = jnp.sum(jnp.where(m, per_elem, 0.0))
        s_cnt = jnp.sum(m.astype(jnp.float32))
        sel = lane_id == b
        bce_row = bce_row + jnp.where(sel, s_bce, 0.0)
        cnt_row = cnt_row + jnp.where(sel, s_cnt, 0.0)
    bce_acc[...] = bce_row
    cnt_acc[...] = cnt_row

    # Finalize on the last tile:  loss = (sum_b bce_b / cnt_b) / max(n, 1).
    @pl.when(pid == pl.num_programs(0) - 1)
    def _finalize():
        bce = bce_acc[...]
        cnt = cnt_acc[...]
        nonempty = cnt > 0.0                      # lanes >= BINS stay at zero
        per_bin = jnp.where(nonempty, bce / jnp.maximum(cnt, 1.0), 0.0)
        n_bins = jnp.sum(nonempty.astype(jnp.float32))
        loss = jnp.sum(per_bin) / jnp.maximum(n_bins, 1.0)
        out_ref[0, 0] = loss * jnp.float32(LOSS_WEIGHT)


@functools.partial(jax.jit, static_argnames=("tile_n",))
def ghmc_loss(pred, target, label_weight=None, *, tile_n=4096):
    """pred: (N, C) logits (any float dtype); target: (N,) int class ids;
    label_weight: optional (N, C) weights (only >0 matters)."""
    n, c = pred.shape

    lanes = _round_up(max(n, 1), 128)
    tn = min(tile_n, lanes)                       # lane extent, multiple of 128
    n_pad = _round_up(n, tn)
    grid = (n_pad // tn,)

    # Lane-dense layout: (N, C) -> (C, N_pad); native dtype kept, cast in-kernel.
    pred_t = jnp.pad(jnp.transpose(pred), ((0, 0), (0, n_pad - n)))
    tgt = jnp.pad(target.reshape(1, n).astype(jnp.int32), ((0, 0), (0, n_pad - n)))

    has_lw = label_weight is not None
    inputs = [pred_t, tgt]
    in_specs = [
        pl.BlockSpec((c, tn), lambda i: (0, i)),
        pl.BlockSpec((1, tn), lambda i: (0, i)),
    ]
    if has_lw:
        lw_t = jnp.pad(jnp.transpose(label_weight), ((0, 0), (0, n_pad - n)))
        inputs.append(lw_t)                       # padding -> lw == 0 -> invalid
        in_specs.append(pl.BlockSpec((c, tn), lambda i: (0, i)))

    kernel = functools.partial(_ghmc_kernel, n_valid=n, has_lw=has_lw)

    out = pl.pallas_call(
        kernel,
        out_shape=jax.ShapeDtypeStruct((1, 1), jnp.float32),
        grid=grid,
        in_specs=in_specs,
        out_specs=pl.BlockSpec((1, 1), lambda i: (0, 0),
                               memory_space=pltpu.MemorySpace.SMEM),
        scratch_shapes=[
            pltpu.VMEM((1, _ACC_LANES), jnp.float32),   # per-bin BCE sums
            pltpu.VMEM((1, _ACC_LANES), jnp.float32),   # per-bin valid counts
        ],
        compiler_params=pltpu.CompilerParams(
            dimension_semantics=("arbitrary",),          # N is a reduction axis
        ),
    )(*inputs)
    return out[0, 0]


if __name__ == "__main__":
    key = jax.random.PRNGKey(0)
    k1, k2, k3 = jax.random.split(key, 3)
    N, C = 64, 5   # module hard-codes 5 classes via scatter into zeros(N, 5)

    pred = jax.random.normal(k1, (N, C), dtype=jnp.float32)
    target = jax.random.randint(k2, (N,), 0, C, dtype=jnp.int32)

    # Default path (label_weight=None): skips the label_weight input entirely.
    loss = ghmc_loss(pred, target)
    jax.block_until_ready(loss)

    # Explicit label_weight path (some entries masked out).
    label_weight = (jax.random.uniform(k3, (N, C)) > 0.2).astype(jnp.float32)
    loss_w = ghmc_loss(pred, target, label_weight)
    jax.block_until_ready(loss_w)

    print("KERNEL_OK")
</pallas_src>

<mosaic_0001>
module attributes {stable_mosaic.version = 11 : i64} {
  func.func @_ghmc_kernel(%arg0: i32, %arg1: memref<5x128xf32, #tpu.memory_space<vmem>>, %arg2: memref<1x128xi32, #tpu.memory_space<vmem>>, %arg3: memref<1x1xf32, #tpu.memory_space<smem>>, %arg4: memref<1x128xf32, #tpu.memory_space<vmem>>, %arg5: memref<1x128xf32, #tpu.memory_space<vmem>>) attributes {dimension_semantics = [#tpu.dimension_semantics<arbitrary>], iteration_bounds = array<i64: 1>, scalar_prefetch = 0 : i64, scratch_operands = 2 : i64, tpu.core_type = #tpu.core_type<tc>, window_params = [{transform_indices = @transform_0, window_bounds = array<i64: 5, 128>}, {transform_indices = @transform_1, window_bounds = array<i64: 1, 128>}, {transform_indices = @transform_2, window_bounds = array<i64: 1, 1>}]} {
    %c0_i32 = arith.constant 0 : i32
    %0 = arith.cmpi eq, %arg0, %c0_i32 : i32
    %1 = arith.extui %0 : i1 to i32
    %c0_i32_0 = arith.constant 0 : i32
    %2 = arith.cmpi ne, %1, %c0_i32_0 : i32
    scf.if %2 {
      %cst_81 = arith.constant 0.000000e+00 : f32
      %291 = vector.broadcast %cst_81 : f32 to vector<1x128xf32>
      %c0_82 = arith.constant 0 : index
      %c0_83 = arith.constant 0 : index
      %292 = vector.load %arg4[%c0_82, %c0_83] : memref<1x128xf32, #tpu.memory_space<vmem>>, vector<1x128xf32>
      tpu.vector_store %arg4[%c0_82, %c0_83], %291 {strides = array<i32>} : memref<1x128xf32, #tpu.memory_space<vmem>>, vector<1x128xf32>,
      %cst_84 = arith.constant 0.000000e+00 : f32
      %293 = vector.broadcast %cst_84 : f32 to vector<1x128xf32>
      %c0_85 = arith.constant 0 : index
      %c0_86 = arith.constant 0 : index
      %294 = vector.load %arg5[%c0_85, %c0_86] : memref<1x128xf32, #tpu.memory_space<vmem>>, vector<1x128xf32>
      tpu.vector_store %arg5[%c0_85, %c0_86], %293 {strides = array<i32>} : memref<1x128xf32, #tpu.memory_space<vmem>>, vector<1x128xf32>,
    } else {
    }
    %c0 = arith.constant 0 : index
    %c0_1 = arith.constant 0 : index
    %3 = vector.load %arg1[%c0, %c0_1] : memref<5x128xf32, #tpu.memory_space<vmem>>, vector<5x128xf32>
    %c0_2 = arith.constant 0 : index
    %c0_3 = arith.constant 0 : index
    %4 = vector.load %arg2[%c0_2, %c0_3] : memref<1x128xi32, #tpu.memory_space<vmem>>, vector<1x128xi32>
    %5 = tpu.iota {dimensions = array<i32: 0>} : vector<5x128xi32>
    %6 = vector.broadcast %4 : vector<1x128xi32> to vector<5x128xi32>
    %7 = arith.cmpi eq, %5, %6 : vector<5x128xi32>
    %8 = arith.extui %7 : vector<5x128xi1> to vector<5x128xi32>
    %9 = arith.sitofp %8 : vector<5x128xi32> to vector<5x128xf32>
    %10 = arith.negf %3 : vector<5x128xf32>
    %11 = math.exp %10 : vector<5x128xf32>
    %cst = arith.constant 1.000000e+00 : f32
    %12 = vector.broadcast %cst : f32 to vector<5x128xf32>
    %13 = arith.addf %12, %11 : vector<5x128xf32>
    %14 = arith.divf %12, %13 : vector<5x128xf32>
    %15 = arith.subf %14, %9 : vector<5x128xf32>
    %16 = math.absf %15 : vector<5x128xf32>
    %17 = tpu.iota {dimensions = array<i32: 1>} : vector<5x128xi32>
    %c128_i32 = arith.constant 128 : i32
    %18 = arith.muli %arg0, %c128_i32 : i32
    %19 = vector.broadcast %18 : i32 to vector<5x128xi32>
    %20 = arith.addi %17, %19 : vector<5x128xi32>
    %c64_i32 = arith.constant 64 : i32
    %21 = vector.broadcast %c64_i32 : i32 to vector<5x128xi32>
    %22 = arith.cmpi slt, %20, %21 : vector<5x128xi32>
    %cst_4 = arith.constant 0.000000e+00 : f32
    %23 = vector.broadcast %cst_4 : f32 to vector<5x128xf32>
    %24 = arith.cmpf oge, %3, %23 : vector<5x128xf32>
    %cst_5 = arith.constant 1.000000e+00 : f32
    %25 = vector.broadcast %cst_5 : f32 to vector<5x128xf32>
    %26 = arith.subf %25, %14 : vector<5x128xf32>
    %27 = arith.select %24, %14, %26 : vector<5x128xi1>, vector<5x128xf32>
    %cst_6 = arith.constant 0.000000e+00 : f32
    %28 = vector.broadcast %cst_6 : f32 to vector<5x128xf32>
    %29 = arith.maximumf %3, %28 : vector<5x128xf32>
    %30 = arith.mulf %3, %9 : vector<5x128xf32>
    %31 = arith.subf %29, %30 : vector<5x128xf32>
    %32 = math.log %27 : vector<5x128xf32>
    %33 = arith.subf %31, %32 : vector<5x128xf32>
    %cst_7 = arith.constant 1.000000e+01 : f32
    %34 = vector.broadcast %cst_7 : f32 to vector<5x128xf32>
    %35 = arith.mulf %16, %34 : vector<5x128xf32>
    %36 = arith.fptosi %35 : vector<5x128xf32> to vector<5x128xi32>
    %c0_i32_8 = arith.constant 0 : i32
    %c9_i32 = arith.constant 9 : i32
    %37 = vector.broadcast %c0_i32_8 : i32 to vector<5x128xi32>
    %38 = arith.maxsi %37, %36 : vector<5x128xi32>
    %39 = vector.broadcast %c9_i32 : i32 to vector<5x128xi32>
    %40 = arith.minsi %39, %38 : vector<5x128xi32>
    %c10_i32 = arith.constant 10 : i32
    %41 = vector.broadcast %c10_i32 : i32 to vector<5x128xi32>
    %42 = arith.select %22, %40, %41 : vector<5x128xi1>, vector<5x128xi32>
    %43 = tpu.iota {dimensions = array<i32: 1>} : vector<1x128xi32>
    %c0_9 = arith.constant 0 : index
    %c0_10 = arith.constant 0 : index
    %44 = vector.load %arg4[%c0_9, %c0_10] : memref<1x128xf32, #tpu.memory_space<vmem>>, vector<1x128xf32>
    %c0_11 = arith.constant 0 : index
    %c0_12 = arith.constant 0 : index
    %45 = vector.load %arg5[%c0_11, %c0_12] : memref<1x128xf32, #tpu.memory_space<vmem>>, vector<1x128xf32>
    %c0_i32_13 = arith.constant 0 : i32
    %46 = vector.broadcast %c0_i32_13 : i32 to vector<5x128xi32>
    %47 = arith.cmpi eq, %42, %46 : vector<5x128xi32>
    %cst_14 = arith.constant 0.000000e+00 : f32
    %48 = vector.broadcast %cst_14 : f32 to vector<5x128xf32>
    %49 = arith.select %47, %33, %48 : vector<5x128xi1>, vector<5x128xf32>
    %50 = vector.shape_cast %49 : vector<5x128xf32> to vector<1x5x128xf32>
    %cst_15 = arith.constant dense<0.000000e+00> : vector<1xf32>
    %51 = vector.multi_reduction <add>, %50, %cst_15 [1, 2] : vector<1x5x128xf32> to vector<1xf32>
    %52 = vector.shape_cast %51 : vector<1xf32> to vector<1x1x1xf32>
    %53 = vector.extract %52[0, 0, 0] : f32 from vector<1x1x1xf32>
    %54 = arith.extui %47 : vector<5x128xi1> to vector<5x128xi32>
    %55 = arith.sitofp %54 : vector<5x128xi32> to vector<5x128xf32>
    %56 = vector.shape_cast %55 : vector<5x128xf32> to vector<1x5x128xf32>
    %cst_16 = arith.constant dense<0.000000e+00> : vector<1xf32>
    %57 = vector.multi_reduction <add>, %56, %cst_16 [1, 2] : vector<1x5x128xf32> to vector<1xf32>
    %58 = vector.shape_cast %57 : vector<1xf32> to vector<1x1x1xf32>
    %59 = vector.extract %58[0, 0, 0] : f32 from vector<1x1x1xf32>
    %c0_i32_17 = arith.constant 0 : i32
    %60 = vector.broadcast %c0_i32_17 : i32 to vector<1x128xi32>
    %61 = arith.cmpi eq, %43, %60 : vector<1x128xi32>
    %cst_18 = arith.constant 0.000000e+00 : f32
    %62 = vector.broadcast %53 : f32 to vector<1x128xf32>
    %63 = vector.broadcast %cst_18 : f32 to vector<1x128xf32>
    %64 = arith.select %61, %62, %63 : vector<1x128xi1>, vector<1x128xf32>
    %65 = arith.addf %44, %64 : vector<1x128xf32>
    %cst_19 = arith.constant 0.000000e+00 : f32
    %66 = vector.broadcast %59 : f32 to vector<1x128xf32>
    %67 = vector.broadcast %cst_19 : f32 to vector<1x128xf32>
    %68 = arith.select %61, %66, %67 : vector<1x128xi1>, vector<1x128xf32>
    %69 = arith.addf %45, %68 : vector<1x128xf32>
    %c1_i32 = arith.constant 1 : i32
    %70 = vector.broadcast %c1_i32 : i32 to vector<5x128xi32>
    %71 = arith.cmpi eq, %42, %70 : vector<5x128xi32>
    %cst_20 = arith.constant 0.000000e+00 : f32
    %72 = vector.broadcast %cst_20 : f32 to vector<5x128xf32>
    %73 = arith.select %71, %33, %72 : vector<5x128xi1>, vector<5x128xf32>
    %74 = vector.shape_cast %73 : vector<5x128xf32> to vector<1x5x128xf32>
    %cst_21 = arith.constant dense<0.000000e+00> : vector<1xf32>
    %75 = vector.multi_reduction <add>, %74, %cst_21 [1, 2] : vector<1x5x128xf32> to vector<1xf32>
    %76 = vector.shape_cast %75 : vector<1xf32> to vector<1x1x1xf32>
    %77 = vector.extract %76[0, 0, 0] : f32 from vector<1x1x1xf32>
    %78 = arith.extui %71 : vector<5x128xi1> to vector<5x128xi32>
    %79 = arith.sitofp %78 : vector<5x128xi32> to vector<5x128xf32>
    %80 = vector.shape_cast %79 : vector<5x128xf32> to vector<1x5x128xf32>
    %cst_22 = arith.constant dense<0.000000e+00> : vector<1xf32>
    %81 = vector.multi_reduction <add>, %80, %cst_22 [1, 2] : vector<1x5x128xf32> to vector<1xf32>
    %82 = vector.shape_cast %81 : vector<1xf32> to vector<1x1x1xf32>
    %83 = vector.extract %82[0, 0, 0] : f32 from vector<1x1x1xf32>
    %c1_i32_23 = arith.constant 1 : i32
    %84 = vector.broadcast %c1_i32_23 : i32 to vector<1x128xi32>
    %85 = arith.cmpi eq, %43, %84 : vector<1x128xi32>
    %cst_24 = arith.constant 0.000000e+00 : f32
    %86 = vector.broadcast %77 : f32 to vector<1x128xf32>
    %87 = vector.broadcast %cst_24 : f32 to vector<1x128xf32>
    %88 = arith.select %85, %86, %87 : vector<1x128xi1>, vector<1x128xf32>
    %89 = arith.addf %65, %88 : vector<1x128xf32>
    %cst_25 = arith.constant 0.000000e+00 : f32
    %90 = vector.broadcast %83 : f32 to vector<1x128xf32>
    %91 = vector.broadcast %cst_25 : f32 to vector<1x128xf32>
    %92 = arith.select %85, %90, %91 : vector<1x128xi1>, vector<1x128xf32>
    %93 = arith.addf %69, %92 : vector<1x128xf32>
    %c2_i32 = arith.constant 2 : i32
    %94 = vector.broadcast %c2_i32 : i32 to vector<5x128xi32>
    %95 = arith.cmpi eq, %42, %94 : vector<5x128xi32>
    %cst_26 = arith.constant 0.000000e+00 : f32
    %96 = vector.broadcast %cst_26 : f32 to vector<5x128xf32>
    %97 = arith.select %95, %33, %96 : vector<5x128xi1>, vector<5x128xf32>
    %98 = vector.shape_cast %97 : vector<5x128xf32> to vector<1x5x128xf32>
    %cst_27 = arith.constant dense<0.000000e+00> : vector<1xf32>
    %99 = vector.multi_reduction <add>, %98, %cst_27 [1, 2] : vector<1x5x128xf32> to vector<1xf32>
    %100 = vector.shape_cast %99 : vector<1xf32> to vector<1x1x1xf32>
    %101 = vector.extract %100[0, 0, 0] : f32 from vector<1x1x1xf32>
    %102 = arith.extui %95 : vector<5x128xi1> to vector<5x128xi32>
    %103 = arith.sitofp %102 : vector<5x128xi32> to vector<5x128xf32>
    %104 = vector.shape_cast %103 : vector<5x128xf32> to vector<1x5x128xf32>
    %cst_28 = arith.constant dense<0.000000e+00> : vector<1xf32>
    %105 = vector.multi_reduction <add>, %104, %cst_28 [1, 2] : vector<1x5x128xf32> to vector<1xf32>
    %106 = vector.shape_cast %105 : vector<1xf32> to vector<1x1x1xf32>
    %107 = vector.extract %106[0, 0, 0] : f32 from vector<1x1x1xf32>
    %c2_i32_29 = arith.constant 2 : i32
    %108 = vector.broadcast %c2_i32_29 : i32 to vector<1x128xi32>
    %109 = arith.cmpi eq, %43, %108 : vector<1x128xi32>
    %cst_30 = arith.constant 0.000000e+00 : f32
    %110 = vector.broadcast %101 : f32 to vector<1x128xf32>
    %111 = vector.broadcast %cst_30 : f32 to vector<1x128xf32>
    %112 = arith.select %109, %110, %111 : vector<1x128xi1>, vector<1x128xf32>
    %113 = arith.addf %89, %112 : vector<1x128xf32>
    %cst_31 = arith.constant 0.000000e+00 : f32
    %114 = vector.broadcast %107 : f32 to vector<1x128xf32>
    %115 = vector.broadcast %cst_31 : f32 to vector<1x128xf32>
    %116 = arith.select %109, %114, %115 : vector<1x128xi1>, vector<1x128xf32>
    %117 = arith.addf %93, %116 : vector<1x128xf32>
    %c3_i32 = arith.constant 3 : i32
    %118 = vector.broadcast %c3_i32 : i32 to vector<5x128xi32>
    %119 = arith.cmpi eq, %42, %118 : vector<5x128xi32>
    %cst_32 = arith.constant 0.000000e+00 : f32
    %120 = vector.broadcast %cst_32 : f32 to vector<5x128xf32>
    %121 = arith.select %119, %33, %120 : vector<5x128xi1>, vector<5x128xf32>
    %122 = vector.shape_cast %121 : vector<5x128xf32> to vector<1x5x128xf32>
    %cst_33 = arith.constant dense<0.000000e+00> : vector<1xf32>
    %123 = vector.multi_reduction <add>, %122, %cst_33 [1, 2] : vector<1x5x128xf32> to vector<1xf32>
    %124 = vector.shape_cast %123 : vector<1xf32> to vector<1x1x1xf32>
    %125 = vector.extract %124[0, 0, 0] : f32 from vector<1x1x1xf32>
    %126 = arith.extui %119 : vector<5x128xi1> to vector<5x128xi32>
    %127 = arith.sitofp %126 : vector<5x128xi32> to vector<5x128xf32>
    %128 = vector.shape_cast %127 : vector<5x128xf32> to vector<1x5x128xf32>
    %cst_34 = arith.constant dense<0.000000e+00> : vector<1xf32>
    %129 = vector.multi_reduction <add>, %128, %cst_34 [1, 2] : vector<1x5x128xf32> to vector<1xf32>
    %130 = vector.shape_cast %129 : vector<1xf32> to vector<1x1x1xf32>
    %131 = vector.extract %130[0, 0, 0] : f32 from vector<1x1x1xf32>
    %c3_i32_35 = arith.constant 3 : i32
    %132 = vector.broadcast %c3_i32_35 : i32 to vector<1x128xi32>
    %133 = arith.cmpi eq, %43, %132 : vector<1x128xi32>
    %cst_36 = arith.constant 0.000000e+00 : f32
    %134 = vector.broadcast %125 : f32 to vector<1x128xf32>
    %135 = vector.broadcast %cst_36 : f32 to vector<1x128xf32>
    %136 = arith.select %133, %134, %135 : vector<1x128xi1>, vector<1x128xf32>
    %137 = arith.addf %113, %136 : vector<1x128xf32>
    %cst_37 = arith.constant 0.000000e+00 : f32
    %138 = vector.broadcast %131 : f32 to vector<1x128xf32>
    %139 = vector.broadcast %cst_37 : f32 to vector<1x128xf32>
    %140 = arith.select %133, %138, %139 : vector<1x128xi1>, vector<1x128xf32>
    %141 = arith.addf %117, %140 : vector<1x128xf32>
    %c4_i32 = arith.constant 4 : i32
    %142 = vector.broadcast %c4_i32 : i32 to vector<5x128xi32>
    %143 = arith.cmpi eq, %42, %142 : vector<5x128xi32>
    %cst_38 = arith.constant 0.000000e+00 : f32
    %144 = vector.broadcast %cst_38 : f32 to vector<5x128xf32>
    %145 = arith.select %143, %33, %144 : vector<5x128xi1>, vector<5x128xf32>
    %146 = vector.shape_cast %145 : vector<5x128xf32> to vector<1x5x128xf32>
    %cst_39 = arith.constant dense<0.000000e+00> : vector<1xf32>
    %147 = vector.multi_reduction <add>, %146, %cst_39 [1, 2] : vector<1x5x128xf32> to vector<1xf32>
    %148 = vector.shape_cast %147 : vector<1xf32> to vector<1x1x1xf32>
    %149 = vector.extract %148[0, 0, 0] : f32 from vector<1x1x1xf32>
    %150 = arith.extui %143 : vector<5x128xi1> to vector<5x128xi32>
    %151 = arith.sitofp %150 : vector<5x128xi32> to vector<5x128xf32>
    %152 = vector.shape_cast %151 : vector<5x128xf32> to vector<1x5x128xf32>
    %cst_40 = arith.constant dense<0.000000e+00> : vector<1xf32>
    %153 = vector.multi_reduction <add>, %152, %cst_40 [1, 2] : vector<1x5x128xf32> to vector<1xf32>
    %154 = vector.shape_cast %153 : vector<1xf32> to vector<1x1x1xf32>
    %155 = vector.extract %154[0, 0, 0] : f32 from vector<1x1x1xf32>
    %c4_i32_41 = arith.constant 4 : i32
    %156 = vector.broadcast %c4_i32_41 : i32 to vector<1x128xi32>
    %157 = arith.cmpi eq, %43, %156 : vector<1x128xi32>
    %cst_42 = arith.constant 0.000000e+00 : f32
    %158 = vector.broadcast %149 : f32 to vector<1x128xf32>
    %159 = vector.broadcast %cst_42 : f32 to vector<1x128xf32>
    %160 = arith.select %157, %158, %159 : vector<1x128xi1>, vector<1x128xf32>
    %161 = arith.addf %137, %160 : vector<1x128xf32>
    %cst_43 = arith.constant 0.000000e+00 : f32
    %162 = vector.broadcast %155 : f32 to vector<1x128xf32>
    %163 = vector.broadcast %cst_43 : f32 to vector<1x128xf32>
    %164 = arith.select %157, %162, %163 : vector<1x128xi1>, vector<1x128xf32>
    %165 = arith.addf %141, %164 : vector<1x128xf32>
    %c5_i32 = arith.constant 5 : i32
    %166 = vector.broadcast %c5_i32 : i32 to vector<5x128xi32>
    %167 = arith.cmpi eq, %42, %166 : vector<5x128xi32>
    %cst_44 = arith.constant 0.000000e+00 : f32
    %168 = vector.broadcast %cst_44 : f32 to vector<5x128xf32>
    %169 = arith.select %167, %33, %168 : vector<5x128xi1>, vector<5x128xf32>
    %170 = vector.shape_cast %169 : vector<5x128xf32> to vector<1x5x128xf32>
    %cst_45 = arith.constant dense<0.000000e+00> : vector<1xf32>
    %171 = vector.multi_reduction <add>, %170, %cst_45 [1, 2] : vector<1x5x128xf32> to vector<1xf32>
    %172 = vector.shape_cast %171 : vector<1xf32> to vector<1x1x1xf32>
    %173 = vector.extract %172[0, 0, 0] : f32 from vector<1x1x1xf32>
    %174 = arith.extui %167 : vector<5x128xi1> to vector<5x128xi32>
    %175 = arith.sitofp %174 : vector<5x128xi32> to vector<5x128xf32>
    %176 = vector.shape_cast %175 : vector<5x128xf32> to vector<1x5x128xf32>
    %cst_46 = arith.constant dense<0.000000e+00> : vector<1xf32>
    %177 = vector.multi_reduction <add>, %176, %cst_46 [1, 2] : vector<1x5x128xf32> to vector<1xf32>
    %178 = vector.shape_cast %177 : vector<1xf32> to vector<1x1x1xf32>
    %179 = vector.extract %178[0, 0, 0] : f32 from vector<1x1x1xf32>
    %c5_i32_47 = arith.constant 5 : i32
    %180 = vector.broadcast %c5_i32_47 : i32 to vector<1x128xi32>
    %181 = arith.cmpi eq, %43, %180 : vector<1x128xi32>
    %cst_48 = arith.constant 0.000000e+00 : f32
    %182 = vector.broadcast %173 : f32 to vector<1x128xf32>
    %183 = vector.broadcast %cst_48 : f32 to vector<1x128xf32>
    %184 = arith.select %181, %182, %183 : vector<1x128xi1>, vector<1x128xf32>
    %185 = arith.addf %161, %184 : vector<1x128xf32>
    %cst_49 = arith.constant 0.000000e+00 : f32
    %186 = vector.broadcast %179 : f32 to vector<1x128xf32>
    %187 = vector.broadcast %cst_49 : f32 to vector<1x128xf32>
    %188 = arith.select %181, %186, %187 : vector<1x128xi1>, vector<1x128xf32>
    %189 = arith.addf %165, %188 : vector<1x128xf32>
    %c6_i32 = arith.constant 6 : i32
    %190 = vector.broadcast %c6_i32 : i32 to vector<5x128xi32>
    %191 = arith.cmpi eq, %42, %190 : vector<5x128xi32>
    %cst_50 = arith.constant 0.000000e+00 : f32
    %192 = vector.broadcast %cst_50 : f32 to vector<5x128xf32>
    %193 = arith.select %191, %33, %192 : vector<5x128xi1>, vector<5x128xf32>
    %194 = vector.shape_cast %193 : vector<5x128xf32> to vector<1x5x128xf32>
    %cst_51 = arith.constant dense<0.000000e+00> : vector<1xf32>
    %195 = vector.multi_reduction <add>, %194, %cst_51 [1, 2] : vector<1x5x128xf32> to vector<1xf32>
    %196 = vector.shape_cast %195 : vector<1xf32> to vector<1x1x1xf32>
    %197 = vector.extract %196[0, 0, 0] : f32 from vector<1x1x1xf32>
    %198 = arith.extui %191 : vector<5x128xi1> to vector<5x128xi32>
    %199 = arith.sitofp %198 : vector<5x128xi32> to vector<5x128xf32>
    %200 = vector.shape_cast %199 : vector<5x128xf32> to vector<1x5x128xf32>
    %cst_52 = arith.constant dense<0.000000e+00> : vector<1xf32>
    %201 = vector.multi_reduction <add>, %200, %cst_52 [1, 2] : vector<1x5x128xf32> to vector<1xf32>
    %202 = vector.shape_cast %201 : vector<1xf32> to vector<1x1x1xf32>
    %203 = vector.extract %202[0, 0, 0] : f32 from vector<1x1x1xf32>
    %c6_i32_53 = arith.constant 6 : i32
    %204 = vector.broadcast %c6_i32_53 : i32 to vector<1x128xi32>
    %205 = arith.cmpi eq, %43, %204 : vector<1x128xi32>
    %cst_54 = arith.constant 0.000000e+00 : f32
    %206 = vector.broadcast %197 : f32 to vector<1x128xf32>
    %207 = vector.broadcast %cst_54 : f32 to vector<1x128xf32>
    %208 = arith.select %205, %206, %207 : vector<1x128xi1>, vector<1x128xf32>
    %209 = arith.addf %185, %208 : vector<1x128xf32>
    %cst_55 = arith.constant 0.000000e+00 : f32
    %210 = vector.broadcast %203 : f32 to vector<1x128xf32>
    %211 = vector.broadcast %cst_55 : f32 to vector<1x128xf32>
    %212 = arith.select %205, %210, %211 : vector<1x128xi1>, vector<1x128xf32>
    %213 = arith.addf %189, %212 : vector<1x128xf32>
    %c7_i32 = arith.constant 7 : i32
    %214 = vector.broadcast %c7_i32 : i32 to vector<5x128xi32>
    %215 = arith.cmpi eq, %42, %214 : vector<5x128xi32>
    %cst_56 = arith.constant 0.000000e+00 : f32
    %216 = vector.broadcast %cst_56 : f32 to vector<5x128xf32>
    %217 = arith.select %215, %33, %216 : vector<5x128xi1>, vector<5x128xf32>
    %218 = vector.shape_cast %217 : vector<5x128xf32> to vector<1x5x128xf32>
    %cst_57 = arith.constant dense<0.000000e+00> : vector<1xf32>
    %219 = vector.multi_reduction <add>, %218, %cst_57 [1, 2] : vector<1x5x128xf32> to vector<1xf32>
    %220 = vector.shape_cast %219 : vector<1xf32> to vector<1x1x1xf32>
    %221 = vector.extract %220[0, 0, 0] : f32 from vector<1x1x1xf32>
    %222 = arith.extui %215 : vector<5x128xi1> to vector<5x128xi32>
    %223 = arith.sitofp %222 : vector<5x128xi32> to vector<5x128xf32>
    %224 = vector.shape_cast %223 : vector<5x128xf32> to vector<1x5x128xf32>
    %cst_58 = arith.constant dense<0.000000e+00> : vector<1xf32>
    %225 = vector.multi_reduction <add>, %224, %cst_58 [1, 2] : vector<1x5x128xf32> to vector<1xf32>
    %226 = vector.shape_cast %225 : vector<1xf32> to vector<1x1x1xf32>
    %227 = vector.extract %226[0, 0, 0] : f32 from vector<1x1x1xf32>
    %c7_i32_59 = arith.constant 7 : i32
    %228 = vector.broadcast %c7_i32_59 : i32 to vector<1x128xi32>
    %229 = arith.cmpi eq, %43, %228 : vector<1x128xi32>
    %cst_60 = arith.constant 0.000000e+00 : f32
    %230 = vector.broadcast %221 : f32 to vector<1x128xf32>
    %231 = vector.broadcast %cst_60 : f32 to vector<1x128xf32>
    %232 = arith.select %229, %230, %231 : vector<1x128xi1>, vector<1x128xf32>
    %233 = arith.addf %209, %232 : vector<1x128xf32>
    %cst_61 = arith.constant 0.000000e+00 : f32
    %234 = vector.broadcast %227 : f32 to vector<1x128xf32>
    %235 = vector.broadcast %cst_61 : f32 to vector<1x128xf32>
    %236 = arith.select %229, %234, %235 : vector<1x128xi1>, vector<1x128xf32>
    %237 = arith.addf %213, %236 : vector<1x128xf32>
    %c8_i32 = arith.constant 8 : i32
    %238 = vector.broadcast %c8_i32 : i32 to vector<5x128xi32>
    %239 = arith.cmpi eq, %42, %238 : vector<5x128xi32>
    %cst_62 = arith.constant 0.000000e+00 : f32
    %240 = vector.broadcast %cst_62 : f32 to vector<5x128xf32>
    %241 = arith.select %239, %33, %240 : vector<5x128xi1>, vector<5x128xf32>
    %242 = vector.shape_cast %241 : vector<5x128xf32> to vector<1x5x128xf32>
    %cst_63 = arith.constant dense<0.000000e+00> : vector<1xf32>
    %243 = vector.multi_reduction <add>, %242, %cst_63 [1, 2] : vector<1x5x128xf32> to vector<1xf32>
    %244 = vector.shape_cast %243 : vector<1xf32> to vector<1x1x1xf32>
    %245 = vector.extract %244[0, 0, 0] : f32 from vector<1x1x1xf32>
    %246 = arith.extui %239 : vector<5x128xi1> to vector<5x128xi32>
    %247 = arith.sitofp %246 : vector<5x128xi32> to vector<5x128xf32>
    %248 = vector.shape_cast %247 : vector<5x128xf32> to vector<1x5x128xf32>
    %cst_64 = arith.constant dense<0.000000e+00> : vector<1xf32>
    %249 = vector.multi_reduction <add>, %248, %cst_64 [1, 2] : vector<1x5x128xf32> to vector<1xf32>
    %250 = vector.shape_cast %249 : vector<1xf32> to vector<1x1x1xf32>
    %251 = vector.extract %250[0, 0, 0] : f32 from vector<1x1x1xf32>
    %c8_i32_65 = arith.constant 8 : i32
    %252 = vector.broadcast %c8_i32_65 : i32 to vector<1x128xi32>
    %253 = arith.cmpi eq, %43, %252 : vector<1x128xi32>
    %cst_66 = arith.constant 0.000000e+00 : f32
    %254 = vector.broadcast %245 : f32 to vector<1x128xf32>
    %255 = vector.broadcast %cst_66 : f32 to vector<1x128xf32>
    %256 = arith.select %253, %254, %255 : vector<1x128xi1>, vector<1x128xf32>
    %257 = arith.addf %233, %256 : vector<1x128xf32>
    %cst_67 = arith.constant 0.000000e+00 : f32
    %258 = vector.broadcast %251 : f32 to vector<1x128xf32>
    %259 = vector.broadcast %cst_67 : f32 to vector<1x128xf32>
    %260 = arith.select %253, %258, %259 : vector<1x128xi1>, vector<1x128xf32>
    %261 = arith.addf %237, %260 : vector<1x128xf32>
    %c9_i32_68 = arith.constant 9 : i32
    %262 = vector.broadcast %c9_i32_68 : i32 to vector<5x128xi32>
    %263 = arith.cmpi eq, %42, %262 : vector<5x128xi32>
    %cst_69 = arith.constant 0.000000e+00 : f32
    %264 = vector.broadcast %cst_69 : f32 to vector<5x128xf32>
    %265 = arith.select %263, %33, %264 : vector<5x128xi1>, vector<5x128xf32>
    %266 = vector.shape_cast %265 : vector<5x128xf32> to vector<1x5x128xf32>
    %cst_70 = arith.constant dense<0.000000e+00> : vector<1xf32>
    %267 = vector.multi_reduction <add>, %266, %cst_70 [1, 2] : vector<1x5x128xf32> to vector<1xf32>
    %268 = vector.shape_cast %267 : vector<1xf32> to vector<1x1x1xf32>
    %269 = vector.extract %268[0, 0, 0] : f32 from vector<1x1x1xf32>
    %270 = arith.extui %263 : vector<5x128xi1> to vector<5x128xi32>
    %271 = arith.sitofp %270 : vector<5x128xi32> to vector<5x128xf32>
    %272 = vector.shape_cast %271 : vector<5x128xf32> to vector<1x5x128xf32>
    %cst_71 = arith.constant dense<0.000000e+00> : vector<1xf32>
    %273 = vector.multi_reduction <add>, %272, %cst_71 [1, 2] : vector<1x5x128xf32> to vector<1xf32>
    %274 = vector.shape_cast %273 : vector<1xf32> to vector<1x1x1xf32>
    %275 = vector.extract %274[0, 0, 0] : f32 from vector<1x1x1xf32>
    %c9_i32_72 = arith.constant 9 : i32
    %276 = vector.broadcast %c9_i32_72 : i32 to vector<1x128xi32>
    %277 = arith.cmpi eq, %43, %276 : vector<1x128xi32>
    %cst_73 = arith.constant 0.000000e+00 : f32
    %278 = vector.broadcast %269 : f32 to vector<1x128xf32>
    %279 = vector.broadcast %cst_73 : f32 to vector<1x128xf32>
    %280 = arith.select %277, %278, %279 : vector<1x128xi1>, vector<1x128xf32>
    %281 = arith.addf %257, %280 : vector<1x128xf32>
    %cst_74 = arith.constant 0.000000e+00 : f32
    %282 = vector.broadcast %275 : f32 to vector<1x128xf32>
    %283 = vector.broadcast %cst_74 : f32 to vector<1x128xf32>
    %284 = arith.select %277, %282, %283 : vector<1x128xi1>, vector<1x128xf32>
    %285 = arith.addf %261, %284 : vector<1x128xf32>
    %c0_75 = arith.constant 0 : index
    %c0_76 = arith.constant 0 : index
    %286 = vector.load %arg4[%c0_75, %c0_76] : memref<1x128xf32, #tpu.memory_space<vmem>>, vector<1x128xf32>
    tpu.vector_store %arg4[%c0_75, %c0_76], %281 {strides = array<i32>} : memref<1x128xf32, #tpu.memory_space<vmem>>, vector<1x128xf32>,
    %c0_77 = arith.constant 0 : index
    %c0_78 = arith.constant 0 : index
    %287 = vector.load %arg5[%c0_77, %c0_78] : memref<1x128xf32, #tpu.memory_space<vmem>>, vector<1x128xf32>
    tpu.vector_store %arg5[%c0_77, %c0_78], %285 {strides = array<i32>} : memref<1x128xf32, #tpu.memory_space<vmem>>, vector<1x128xf32>,
    %c0_i32_79 = arith.constant 0 : i32
    %288 = arith.cmpi eq, %arg0, %c0_i32_79 : i32
    %289 = arith.extui %288 : i1 to i32
    %c0_i32_80 = arith.constant 0 : i32
    %290 = arith.cmpi ne, %289, %c0_i32_80 : i32
    scf.if %290 {
      %c0_81 = arith.constant 0 : index
      %c0_82 = arith.constant 0 : index
      %291 = vector.load %arg4[%c0_81, %c0_82] : memref<1x128xf32, #tpu.memory_space<vmem>>, vector<1x128xf32>
      %c0_83 = arith.constant 0 : index
      %c0_84 = arith.constant 0 : index
      %292 = vector.load %arg5[%c0_83, %c0_84] : memref<1x128xf32, #tpu.memory_space<vmem>>, vector<1x128xf32>
      %cst_85 = arith.constant 0.000000e+00 : f32
      %293 = vector.broadcast %cst_85 : f32 to vector<1x128xf32>
      %294 = arith.cmpf ogt, %292, %293 : vector<1x128xf32>
      %cst_86 = arith.constant 1.000000e+00 : f32
      %295 = vector.broadcast %cst_86 : f32 to vector<1x128xf32>
      %296 = arith.maximumf %292, %295 : vector<1x128xf32>
      %297 = arith.divf %291, %296 : vector<1x128xf32>
      %cst_87 = arith.constant 0.000000e+00 : f32
      %298 = vector.broadcast %cst_87 : f32 to vector<1x128xf32>
      %299 = arith.select %294, %297, %298 : vector<1x128xi1>, vector<1x128xf32>
      %300 = arith.extui %294 : vector<1x128xi1> to vector<1x128xi32>
      %301 = arith.sitofp %300 : vector<1x128xi32> to vector<1x128xf32>
      %302 = vector.shape_cast %301 : vector<1x128xf32> to vector<1x1x128xf32>
      %cst_88 = arith.constant dense<0.000000e+00> : vector<1xf32>
      %303 = vector.multi_reduction <add>, %302, %cst_88 [1, 2] : vector<1x1x128xf32> to vector<1xf32>
      %304 = vector.shape_cast %303 : vector<1xf32> to vector<1x1x1xf32>
      %305 = vector.extract %304[0, 0, 0] : f32 from vector<1x1x1xf32>
      %306 = vector.shape_cast %299 : vector<1x128xf32> to vector<1x1x128xf32>
      %cst_89 = arith.constant dense<0.000000e+00> : vector<1xf32>
      %307 = vector.multi_reduction <add>, %306, %cst_89 [1, 2] : vector<1x1x128xf32> to vector<1xf32>
      %308 = vector.shape_cast %307 : vector<1xf32> to vector<1x1x1xf32>
      %309 = vector.extract %308[0, 0, 0] : f32 from vector<1x1x1xf32>
      %cst_90 = arith.constant 1.000000e+00 : f32
      %310 = arith.maximumf %305, %cst_90 : f32
      %311 = arith.divf %309, %310 : f32
      %cst_91 = arith.constant 1.000000e+00 : f32
      %312 = arith.mulf %311, %cst_91 : f32
      %c0_92 = arith.constant 0 : index
      %c0_93 = arith.constant 0 : index
      %313 = memref.load %arg3[%c0_92, %c0_93] : memref<1x1xf32, #tpu.memory_space<smem>>
      memref.store %312, %arg3[%c0_92, %c0_93] : memref<1x1xf32, #tpu.memory_space<smem>>
    } else {
    }
    return
  }
  func.func @transform_0(%arg0: i32) -> (i32, i32) {
    %c0_i32 = arith.constant 0 : i32
    %c0_i32_0 = arith.constant 0 : i32
    return %c0_i32, %arg0 : i32, i32
  }
  func.func @transform_1(%arg0: i32) -> (i32, i32) {
    %c0_i32 = arith.constant 0 : i32
    %c0_i32_0 = arith.constant 0 : i32
    return %c0_i32, %arg0 : i32, i32
  }
  func.func @transform_2(%arg0: i32) -> (i32, i32) {
    %c0_i32 = arith.constant 0 : i32
    %c0_i32_0 = arith.constant 0 : i32
    %c0_i32_1 = arith.constant 0 : i32
    return %c0_i32, %c0_i32_0 : i32, i32
  }
}

</mosaic_0001>

<bundles_post_ra>
// kernel: ghmc_loss.1
= control target key start
LH: loop header
LB: loop body
LE: loop exit
PB: predicated region body
PF: predicated region fallthrough
CT: control target
= control target key end

     0   :  { %v512_v2 = vmov 0.0   ;;  %s602_s0 = inlined_call_operand.vmem [shape: f32[5,128], index: 0, kind: input, shape index: {}]   ;;  %s603_s1 = inlined_call_operand.vmem [shape: s32[1,128], index: 1, kind: input, shape index: {}]   ;;  %s604_s2 = inlined_call_operand.hbm [shape: f32[1,1], index: 2, kind: output, shape index: {}]  }
   0x1   :  { %v18_v0 = vld [vmem:[%s602_s0] sm:$0x1f]  ;;  %16 = vst [vmem:[#allocation2] sm:$0x1] %v512_v2  ;;  %17 = vst [vmem:[#allocation3] sm:$0x1] %v512_v2 }
   0x2   :  { %v429_v1 = vmul.f32 -1.442695, %v18_v0 }
   0x3   :  { %7 = vsyncpa [#allocation5], 0  ;;  %v20_v5 = vlaneseq  ;;  %v427_v7 = vld [vmem:[%s603_s1] ss:$0 sm:$0xff]  ;;  %vm43_vm1 = vcmp.ge.f32.partialorder %v18_v0, 0.0  ;;  %v46_v18 = vmax.f32 %v18_v0, 0.0 }
   0x4   :  { %492 = vpow2.f32 %v429_v1  ;;  %vm63_vm5 = vcmask 1044480   ;;  %s513_s4 = smov 1.0   ;;  %s514_s9 = smov [#allocation4]  }
   0x5   :  { %v21_v6 = vshrl.u32 %v20_v5, 7  ;;  %v539_v16 = vand.u32 127, %v20_v5 }
   0x7   :  { %vm26_vm0 = vcmp.eq.s32.totalorder %v21_v6, %v427_v7  ;;  %vm42_vm3 = vcmp.lt.s32.totalorder %v539_v16, 64 }
   0x8   :  { %v428_v8 = vsel %vm26_vm0, 1.0, %v512_v2  ;;  %vm86_vm0 = vcmp.eq.s32.totalorder %v539_v16, 0 }
   0x9   :  { %v47_v19 = vmul.f32 %v428_v8, %v18_v0 }
   0xb   :  { %v48_v23 = vsub.f32 %v46_v18, %v47_v19 }
  0x11   :  { %v493_v3 = vpop.eup %492 }
  0x12   :  { %v32_v4 = vadd.f32 1.0, %v493_v3 }
  0x14   :  { %494 = vrcp.f32 %v32_v4 }
  0x21   :  { %v495_v9 = vpop.eup %494 }
  0x22   :  { %v35_v10 = vsub.f32 %v495_v9, %v428_v8  ;;  %v44_v11 = vsub.f32 1.0, %v495_v9 }
  0x24   :  { %v36_v12 = vand.u32 2147483647, %v35_v10  ;;  %v45_v13 = vsel %vm43_vm1, %v495_v9, %v44_v11  ;;  %vm117_vm1 = vcmp.eq.s32.totalorder %v539_v16, 1 }
  0x25   :  { %496 = vlog2.f32 %v45_v13 }
  0x26   :  { %v52_v14 = vmul.f32 10.0, %v36_v12 }
  0x28   :  { %v441_v15 = vtrunc.f32 %v52_v14 }
  0x2a   :  { %v442_v17 = vcvt.f32.s32 %v441_v15 }
  0x2c   :  { %vm54_vm2 = vcmp.gt.s32.totalorder %v442_v17, 0 }
  0x2d   :  { %v55_v20 = vsel %vm54_vm2, %v442_v17, 0  ;;  %vm148_vm2 = vcmp.eq.s32.totalorder %v539_v16, 2 }
  0x2e   :  { %vm56_vm4 = vcmp.lt.s32.totalorder %v55_v20, 9 }
  0x2f   :  { %v57_v21 = vsel %vm56_vm4, %v55_v20, 9  ;;  %vm210_vm4 = vcmp.eq.s32.totalorder %v539_v16, 4 }
  0x30   :  { %v542_v22 = vsel %vm42_vm3, %v57_v21, 10  ;;  %vm179_vm3 = vcmp.eq.s32.totalorder %v539_v16, 3 }
  0x31   :  { %vm93_vm6 = vcmp.eq.s32.totalorder %v542_v22, 1  ;;  %vm61_vm7 = vcmp.eq.s32.totalorder %v542_v22, 0  ;;  %vm124_vm8 = vcmp.eq.s32.totalorder %v542_v22, 2  ;;  %vm155_vm9 = vcmp.eq.s32.totalorder %v542_v22, 3 }
  0x32   :  { %v497_v24 = vpop.eup %496  ;;  %v431_v25 = vsel %vm93_vm6, 1.0, %v512_v2  ;;  %v430_v26 = vsel %vm61_vm7, 1.0, %v512_v2  ;;  %v432_v27 = vsel %vm124_vm8, 1.0, %v512_v2  ;;  %v433_v33 = vsel %vm155_vm9, 1.0, %v512_v2 }
  0x33   :  { %v50_v28 = vmul.f32 0.6931472, %v497_v24  ;;  %v107_v29 = vsel %vm63_vm5, %v431_v25, 0.0  ;;  %v76_v30 = vsel %vm63_vm5, %v430_v26, 0.0  ;;  %v138_v32 = vsel %vm63_vm5, %v432_v27, 0.0 }
  0x34   :  { %108 = vadd.xlane.f32.xlu1 %v107_v29  ;;  %77 = vadd.xlane.f32.xlu0 %v76_v30  ;;  %vm186_vm10 = vcmp.eq.s32.totalorder %v542_v22, 4  ;;  %v169_v37 = vsel %vm63_vm5, %v433_v33, 0.0  ;;  %vm217_vm11 = vcmp.eq.s32.totalorder %v542_v22, 5  ;;  %vm248_vm12 = vcmp.eq.s32.totalorder %v542_v22, 6 }
  0x35   :  { %v51_v31 = vsub.f32 %v48_v23, %v50_v28  ;;  %v434_v39 = vsel %vm186_vm10, 1.0, %v512_v2  ;;  %v435_v43 = vsel %vm217_vm11, 1.0, %v512_v2  ;;  %v436_v51 = vsel %vm248_vm12, 1.0, %v512_v2 }
  0x36   :  { %v200_v41 = vsel %vm63_vm5, %v434_v39, 0.0  ;;  %v231_v45 = vsel %vm63_vm5, %v435_v43, 0.0  ;;  %vm279_vm13 = vcmp.eq.s32.totalorder %v542_v22, 7  ;;  %v262_v53 = vsel %vm63_vm5, %v436_v51, 0.0 }
  0x37   :  { %v62_v34 = vsel %vm61_vm7, %v51_v31, 0.0  ;;  %v125_v35 = vsel %vm124_vm8, %v51_v31, 0.0  ;;  %v156_v40 = vsel %vm155_vm9, %v51_v31, 0.0  ;;  %v187_v44 = vsel %vm186_vm10, %v51_v31, 0.0 }
  0x38   :  { %139 = vadd.xlane.f32.xlu1 %v138_v32  ;;  %v64_v36 = vsel %vm63_vm5, %v62_v34, 0.0  ;;  %v126_v38 = vsel %vm63_vm5, %v125_v35, 0.0  ;;  %v157_v42 = vsel %vm63_vm5, %v156_v40, 0.0  ;;  %v188_v46 = vsel %vm63_vm5, %v187_v44, 0.0 }
  0x39   :  { %65 = vadd.xlane.f32.xlu0 %v64_v36  ;;  %v94_v47 = vsel %vm93_vm6, %v51_v31, 0.0  ;;  %v218_v48 = vsel %vm217_vm11, %v51_v31, 0.0  ;;  %v249_v52 = vsel %vm248_vm12, %v51_v31, 0.0  ;;  %v437_v55 = vsel %vm279_vm13, 1.0, %v512_v2 }
  0x3a   :  { %v95_v49 = vsel %vm63_vm5, %v94_v47, 0.0  ;;  %v219_v50 = vsel %vm63_vm5, %v218_v48, 0.0  ;;  %v250_v54 = vsel %vm63_vm5, %v249_v52, 0.0  ;;  %v280_v56 = vsel %vm279_vm13, %v51_v31, 0.0 }
  0x3b   :  { %vm310_vm14 = vcmp.eq.s32.totalorder %v542_v22, 8  ;;  %v293_v57 = vsel %vm63_vm5, %v437_v55, 0.0  ;;  %v281_v58 = vsel %vm63_vm5, %v280_v56, 0.0  ;;  %vm341_vm15 = vcmp.eq.s32.totalorder %v542_v22, 9 }
  0x3c   :  { %170 = vadd.xlane.f32.xlu1 %v169_v37  ;;  %v438_v59 = vsel %vm310_vm14, 1.0, %v512_v2  ;;  %v311_v60 = vsel %vm310_vm14, %v51_v31, 0.0  ;;  %v439_v63 = vsel %vm341_vm15, 1.0, %v512_v2  ;;  %v342_v0 = vsel %vm341_vm15, %v51_v31, 0.0 }
  0x3d   :  { %127 = vadd.xlane.f32.xlu0 %v126_v38  ;;  %v324_v61 = vsel %vm63_vm5, %v438_v59, 0.0  ;;  %v312_v62 = vsel %vm63_vm5, %v311_v60, 0.0  ;;  %v355_v1 = vsel %vm63_vm5, %v439_v63, 0.0  ;;  %v343_v3 = vsel %vm63_vm5, %v342_v0, 0.0 }
  0x3e   :  { %vm241_vm5 = vcmp.eq.s32.totalorder %v539_v16, 5  ;;  %vm272_vm6 = vcmp.eq.s32.totalorder %v539_v16, 6  ;;  %vm303_vm7 = vcmp.eq.s32.totalorder %v539_v16, 7  ;;  %vm334_vm8 = vcmp.eq.s32.totalorder %v539_v16, 8 }
  0x3f   :  { %vm365_vm9 = vcmp.eq.s32.totalorder %v539_v16, 9  ;;  %vm386_vm10 = vcmask 1040384  }
  0x40   :  { %201 = vadd.xlane.f32.xlu1 %v200_v41 }
  0x41   :  { %158 = vadd.xlane.f32.xlu0 %v157_v42 }
  0x44   :  { %232 = vadd.xlane.f32.xlu1 %v231_v45 }
  0x45   :  { %189 = vadd.xlane.f32.xlu0 %v188_v46 }
  0x48   :  { %96 = vadd.xlane.f32.xlu1 %v95_v49 }
  0x49   :  { %220 = vadd.xlane.f32.xlu0 %v219_v50 }
  0x4c   :  { %263 = vadd.xlane.f32.xlu1 %v262_v53 }
  0x4d   :  { %251 = vadd.xlane.f32.xlu0 %v250_v54 }
  0x50   :  { %294 = vadd.xlane.f32.xlu1 %v293_v57 }
  0x51   :  { %282 = vadd.xlane.f32.xlu0 %v281_v58 }
  0x54   :  { %325 = vadd.xlane.f32.xlu1 %v324_v61 }
  0x55   :  { %313 = vadd.xlane.f32.xlu0 %v312_v62 }
  0x58   :  { %356 = vadd.xlane.f32.xlu1 %v355_v1 }
  0x59   :  { %344 = vadd.xlane.f32.xlu0 %v343_v3 }
  0xbd   :  { %v109_v4 = vpop.xlane.xlu1 %108  ;;  %v78_v5 = vpop.xlane.xlu0 %77 }
  0xbe   :  { %v79_v6 = vrot.slane %v78_v5, 4  ;;  %v110_v9 = vrot.slane %v109_v4, 4 }
  0xc0   :  { %v80_v7 = vadd.f32 %v79_v6, %v78_v5  ;;  %v111_v17 = vadd.f32 %v110_v9, %v109_v4 }
  0xc1   :  { %v140_v8 = vpop.xlane.xlu1 %139 }
  0xc2   :  { %v81_v10 = vrot.slane %v80_v7, 2  ;;  %v66_v11 = vpop.xlane.xlu0 %65  ;;  %v141_v13 = vrot.slane %v140_v8, 4  ;;  %v112_v25 = vrot.slane %v111_v17, 2 }
  0xc3   :  { %v67_v12 = vrot.slane %v66_v11, 4 }
  0xc4   :  { %v82_v19 = vadd.f32 %v81_v10, %v80_v7  ;;  %v142_v22 = vadd.f32 %v141_v13, %v140_v8  ;;  %v113_v38 = vadd.f32 %v112_v25, %v111_v17 }
  0xc5   :  { %v68_v14 = vadd.f32 %v67_v12, %v66_v11  ;;  %v171_v15 = vpop.xlane.xlu1 %170 }
  0xc6   :  { %v128_v18 = vpop.xlane.xlu0 %127  ;;  %v83_v27 = vrot.slane %v82_v19, 1  ;;  %v172_v28 = vrot.slane %v171_v15, 4  ;;  %v143_v33 = vrot.slane %v142_v22, 2  ;;  %v114_v50 = vrot.slane %v113_v38, 1 }
  0xc7   :  { %v69_v20 = vrot.slane %v68_v14, 2  ;;  %v129_v21 = vrot.slane %v128_v18, 4 }
  0xc8   :  { %v84_v37 = vadd.f32 %v83_v27, %v82_v19  ;;  %v173_v39 = vadd.f32 %v172_v28, %v171_v15  ;;  %v144_v47 = vadd.f32 %v143_v33, %v142_v22  ;;  %v115_v1 = vadd.f32 %v114_v50, %v113_v38 }
  0xc9   :  { %v202_v23 = vpop.xlane.xlu1 %201  ;;  %v70_v24 = vadd.f32 %v69_v20, %v68_v14  ;;  %v130_v31 = vadd.f32 %v129_v21, %v128_v18 }
  0xca   :  { %v159_v26 = vpop.xlane.xlu0 %158  ;;  %v203_v29 = vrot.slane %v202_v23, 4  ;;  %v174_v51 = vrot.slane %v173_v39, 2  ;;  %v145_v61 = vrot.slane %v144_v47, 1 }
  0xcb   :  { %v71_v30 = vrot.slane %v70_v24, 1  ;;  %v160_v32 = vrot.slane %v159_v26, 4  ;;  %v131_v42 = vrot.slane %v130_v31, 2 }
  0xcc   :  { %v204_v40 = vadd.f32 %v203_v29, %v202_v23  ;;  %v175_v5 = vadd.f32 %v174_v51, %v173_v39  ;;  %v146_v14 = vadd.f32 %v145_v61, %v144_v47 }
  0xcd   :  { %v233_v34 = vpop.xlane.xlu1 %232  ;;  %v72_v35 = vadd.f32 %v71_v30, %v70_v24  ;;  %v161_v43 = vadd.f32 %v160_v32, %v159_v26  ;;  %v132_v56 = vadd.f32 %v131_v42, %v130_v31 }
  0xce   :  { %v190_v36 = vpop.xlane.xlu0 %189  ;;  %v234_v44 = vrot.slane %v233_v34, 4  ;;  %v205_v52 = vrot.slane %v204_v40, 2  ;;  %v176_v24 = vrot.slane %v175_v5, 1 }
  0xcf   :  { %v191_v41 = vrot.slane %v190_v36, 4  ;;  %443 = vpush %v72_v35  ;;  %v162_v54 = vrot.slane %v161_v43, 2  ;;  %v133_v9 = vrot.slane %v132_v56, 1 }
  0xd0   :  { %445 = vpush %v84_v37  ;;  %v235_v57 = vadd.f32 %v234_v44, %v233_v34  ;;  %v206_v6 = vadd.f32 %v205_v52, %v204_v40 }
  0xd1   :  { %v192_v45 = vadd.f32 %v191_v41, %v190_v36  ;;  %v97_v46 = vpop.xlane.xlu1 %96  ;;  %v163_v10 = vadd.f32 %v162_v54, %v161_v43  ;;  %v134_v28 = vadd.f32 %v133_v9, %v132_v56  ;;  %v177_v41 = vadd.f32 %v176_v24, %v175_v5 }
  0xd2   :  { %v98_v48 = vrot.slane %v97_v46, 4  ;;  %v221_v49 = vpop.xlane.xlu0 %220  ;;  %v236_v11 = vrot.slane %v235_v57, 2  ;;  %v207_v25 = vrot.slane %v206_v6, 1 }
  0xd3   :  { %v222_v53 = vrot.slane %v221_v49, 4  ;;  %v193_v58 = vrot.slane %v192_v45, 2  ;;  %v164_v29 = vrot.slane %v163_v10, 1 }
  0xd4   :  { %v99_v55 = vadd.f32 %v98_v48, %v97_v46  ;;  %v237_v32 = vadd.f32 %v236_v11, %v235_v57  ;;  %v208_v42 = vadd.f32 %v207_v25, %v206_v6  ;;  %v60_v25 = vld [vmem:[#allocation3] sm:$0x1] }
  0xd5   :  { %v223_v59 = vadd.f32 %v222_v53, %v221_v49  ;;  %v264_v60 = vpop.xlane.xlu1 %263  ;;  %v194_v15 = vadd.f32 %v193_v58, %v192_v45  ;;  %v165_v45 = vadd.f32 %v164_v29, %v163_v10 }
  0xd6   :  { %v100_v62 = vrot.slane %v99_v55, 2  ;;  %v265_v63 = vrot.slane %v264_v60, 4  ;;  %v252_v0 = vpop.xlane.xlu0 %251  ;;  %v238_v49 = vrot.slane %v237_v32, 1 }
  0xd7   :  { %v224_v3 = vrot.slane %v223_v59, 2  ;;  %v253_v4 = vrot.slane %v252_v0, 4  ;;  %v195_v37 = vrot.slane %v194_v15, 1 }
  0xd8   :  { %v266_v7 = vadd.f32 %v265_v63, %v264_v60  ;;  %v101_v8 = vadd.f32 %v100_v62, %v99_v55 }
  0xd9   :  { %v254_v12 = vadd.f32 %v253_v4, %v252_v0  ;;  %v295_v13 = vpop.xlane.xlu1 %294  ;;  %v225_v21 = vadd.f32 %v224_v3, %v223_v59  ;;  %v196_v54 = vadd.f32 %v195_v37, %v194_v15 }
  0xda   :  { %v267_v17 = vrot.slane %v266_v7, 2  ;;  %v296_v18 = vrot.slane %v295_v13, 4  ;;  %v283_v19 = vpop.xlane.xlu0 %282  ;;  %v102_v20 = vrot.slane %v101_v8, 1 }
  0xdb   :  { %v255_v22 = vrot.slane %v254_v12, 2  ;;  %v284_v23 = vrot.slane %v283_v19, 4  ;;  %v226_v39 = vrot.slane %v225_v21, 1 }
  0xdc   :  { %v297_v26 = vadd.f32 %v296_v18, %v295_v13  ;;  %v103_v27 = vadd.f32 %v102_v20, %v101_v8  ;;  %v268_v34 = vadd.f32 %v267_v17, %v266_v7 }
  0xdd   :  { %v285_v30 = vadd.f32 %v284_v23, %v283_v19  ;;  %v326_v31 = vpop.xlane.xlu1 %325  ;;  %v256_v33 = vadd.f32 %v255_v22, %v254_v12  ;;  %v227_v55 = vadd.f32 %v226_v39, %v225_v21  ;;  %v59_v23 = vld [vmem:[#allocation2] sm:$0x1] }
  0xde   :  { %v298_v35 = vrot.slane %v297_v26, 2  ;;  %v327_v36 = vrot.slane %v326_v31, 4  ;;  %447 = vpush %v103_v27  ;;  %v314_v38 = vpop.xlane.xlu0 %313  ;;  %v269_v51 = vrot.slane %v268_v34, 1 }
  0xdf   :  { %v286_v40 = vrot.slane %v285_v30, 2  ;;  %449 = vpush %v115_v1  ;;  %v315_v43 = vrot.slane %v314_v38, 4  ;;  %v257_v46 = vrot.slane %v256_v33, 1  ;;  %v239_v1 = vadd.f32 %v238_v49, %v237_v32 }
  0xe0   :  { %v328_v44 = vadd.f32 %v327_v36, %v326_v31  ;;  %451 = vpush %v134_v28  ;;  %v299_v47 = vadd.f32 %v298_v35, %v297_v26  ;;  %v270_v4 = vadd.f32 %v269_v51, %v268_v34 }
  0xe1   :  { %453 = vpush %v146_v14  ;;  %v316_v48 = vadd.f32 %v315_v43, %v314_v38  ;;  %v357_v50 = vpop.xlane.xlu1 %356  ;;  %v287_v52 = vadd.f32 %v286_v40, %v285_v30  ;;  %v258_v63 = vadd.f32 %v257_v46, %v256_v33 }
  0xe2   :  { %v329_v53 = vrot.slane %v328_v44, 2  ;;  %455 = vpush %v165_v45  ;;  %v358_v56 = vrot.slane %v357_v50, 4  ;;  %v345_v57 = vpop.xlane.xlu0 %344  ;;  %v300_v61 = vrot.slane %v299_v47, 1 }
  0xe3   :  { %457 = vpush %v177_v41  ;;  %v317_v58 = vrot.slane %v316_v48, 2  ;;  %v346_v59 = vrot.slane %v345_v57, 4  ;;  %v288_v60 = vrot.slane %v287_v52, 1 }
  0xe4   :  { %459 = vpush %v196_v54  ;;  %v359_v62 = vadd.f32 %v358_v56, %v357_v50  ;;  %v330_v0 = vadd.f32 %v329_v53, %v328_v44  ;;  %v301_v10 = vadd.f32 %v300_v61, %v299_v47 }
  0xe5   :  { %461 = vpush %v208_v42  ;;  %v347_v3 = vadd.f32 %v346_v59, %v345_v57  ;;  %v318_v5 = vadd.f32 %v317_v58, %v316_v48  ;;  %v289_v7 = vadd.f32 %v288_v60, %v287_v52 }
  0xe6   :  { %463 = vpush %v227_v55  ;;  %v360_v6 = vrot.slane %v359_v62, 2  ;;  %v331_v8 = vrot.slane %v330_v0, 1 }
  0xe7   :  { %465 = vpush %v239_v1  ;;  %v348_v9 = vrot.slane %v347_v3, 2  ;;  %v319_v11 = vrot.slane %v318_v5, 1 }
  0xe8   :  { %467 = vpush %v258_v63  ;;  %v361_v12 = vadd.f32 %v360_v6, %v359_v62  ;;  %v332_v14 = vadd.f32 %v331_v8, %v330_v0 }
  0xe9   :  { %469 = vpush %v270_v4  ;;  %v320_v13 = vadd.f32 %v319_v11, %v318_v5  ;;  %v349_v15 = vadd.f32 %v348_v9, %v347_v3 }
  0xea   :  { %471 = vpush %v289_v7  ;;  %v362_v17 = vrot.slane %v361_v12, 1 }
  0xeb   :  { %473 = vpush %v301_v10  ;;  %v350_v18 = vrot.slane %v349_v15, 1 }
  0xec   :  { %475 = vpush %v320_v13  ;;  %v363_v19 = vadd.f32 %v362_v17, %v361_v12 }
  0xed   :  { %477 = vpush %v332_v14  ;;  %v351_v20 = vadd.f32 %v350_v18, %v349_v15 }
  0xef   :  { %479 = vpush %v351_v20 }
  0xf0   :  { %481 = vpush %v363_v19 }
 0x100   :  { %s444_s0 = spop %443 }
 0x101   :  { %s446_s1 = spop %445  ;;  %v87_v21 = vstv %s444_s0 }
 0x102   :  { %v90_v22 = vstv %s446_s1  ;;  %v88_v24 = vsel %vm86_vm0, %v87_v21, 0.0 }
 0x103   :  { %v91_v26 = vsel %vm86_vm0, %v90_v22, 0.0  ;;  %v89_v27 = vadd.f32 %v88_v24, %v59_v23 }
 0x104   :  { %v92_v29 = vadd.f32 %v91_v26, %v60_v25 }
 0x10f   :  { %s448_s13 = spop %447 }
 0x110   :  { %v118_v28 = vstv %s448_s13  ;;  %s450_s14 = spop %449 }
 0x111   :  { %v119_v30 = vsel %vm117_vm1, %v118_v28, 0.0  ;;  %v121_v31 = vstv %s450_s14  ;;  %s452_s15 = spop %451 }
 0x112   :  { %v120_v32 = vadd.f32 %v119_v30, %v89_v27  ;;  %v122_v33 = vsel %vm117_vm1, %v121_v31, 0.0  ;;  %v149_v34 = vstv %s452_s15  ;;  %s454_s16 = spop %453 }
 0x113   :  { %v123_v35 = vadd.f32 %v122_v33, %v92_v29  ;;  %v150_v36 = vsel %vm148_vm2, %v149_v34, 0.0  ;;  %v152_v37 = vstv %s454_s16  ;;  %s456_s17 = spop %455 }
 0x114   :  { %v151_v38 = vadd.f32 %v150_v36, %v120_v32  ;;  %v153_v39 = vsel %vm148_vm2, %v152_v37, 0.0  ;;  %v180_v40 = vstv %s456_s17  ;;  %s458_s18 = spop %457 }
 0x115   :  { %v154_v41 = vadd.f32 %v153_v39, %v123_v35  ;;  %v181_v42 = vsel %vm179_vm3, %v180_v40, 0.0  ;;  %v183_v43 = vstv %s458_s18  ;;  %s460_s19 = spop %459 }
 0x116   :  { %v182_v44 = vadd.f32 %v181_v42, %v151_v38  ;;  %v184_v45 = vsel %vm179_vm3, %v183_v43, 0.0  ;;  %v211_v46 = vstv %s460_s19  ;;  %s462_s20 = spop %461 }
 0x117   :  { %v185_v47 = vadd.f32 %v184_v45, %v154_v41  ;;  %v212_v48 = vsel %vm210_vm4, %v211_v46, 0.0  ;;  %v214_v49 = vstv %s462_s20  ;;  %s464_s21 = spop %463 }
 0x118   :  { %v213_v50 = vadd.f32 %v212_v48, %v182_v44  ;;  %v215_v51 = vsel %vm210_vm4, %v214_v49, 0.0  ;;  %v242_v52 = vstv %s464_s21  ;;  %s466_s22 = spop %465 }
 0x119   :  { %v216_v53 = vadd.f32 %v215_v51, %v185_v47  ;;  %v243_v54 = vsel %vm241_vm5, %v242_v52, 0.0  ;;  %v245_v55 = vstv %s466_s22  ;;  %s468_s23 = spop %467 }
 0x11a   :  { %v244_v56 = vadd.f32 %v243_v54, %v213_v50  ;;  %v246_v57 = vsel %vm241_vm5, %v245_v55, 0.0  ;;  %v273_v58 = vstv %s468_s23  ;;  %s470_s24 = spop %469 }
 0x11b   :  { %v247_v59 = vadd.f32 %v246_v57, %v216_v53  ;;  %v274_v60 = vsel %vm272_vm6, %v273_v58, 0.0  ;;  %v276_v61 = vstv %s470_s24  ;;  %s472_s25 = spop %471 }
 0x11c   :  { %v275_v62 = vadd.f32 %v274_v60, %v244_v56  ;;  %v277_v63 = vsel %vm272_vm6, %v276_v61, 0.0  ;;  %v304_v0 = vstv %s472_s25  ;;  %s474_s26 = spop %473 }
 0x11d   :  { %v278_v1 = vadd.f32 %v277_v63, %v247_v59  ;;  %v305_v3 = vsel %vm303_vm7, %v304_v0, 0.0  ;;  %v307_v4 = vstv %s474_s26  ;;  %s476_s27 = spop %475 }
 0x11e   :  { %v306_v5 = vadd.f32 %v305_v3, %v275_v62  ;;  %v308_v6 = vsel %vm303_vm7, %v307_v4, 0.0  ;;  %v335_v7 = vstv %s476_s27  ;;  %s478_s28 = spop %477 }
 0x11f   :  { %v309_v8 = vadd.f32 %v308_v6, %v278_v1  ;;  %v336_v9 = vsel %vm334_vm8, %v335_v7, 0.0  ;;  %v338_v10 = vstv %s478_s28 }
 0x120   :  { %v337_v11 = vadd.f32 %v336_v9, %v306_v5  ;;  %v339_v12 = vsel %vm334_vm8, %v338_v10, 0.0  ;;  %s480_s29 = spop %479 }
 0x121   :  { %v340_v13 = vadd.f32 %v339_v12, %v309_v8  ;;  %v366_v14 = vstv %s480_s29  ;;  %s482_s30 = spop %481 }
 0x122   :  { %v367_v15 = vsel %vm365_vm9, %v366_v14, 0.0  ;;  %v369_v17 = vstv %s482_s30 }
 0x123   :  { %v368_v18 = vadd.f32 %v367_v15, %v337_v11  ;;  %v370_v19 = vsel %vm365_vm9, %v369_v17, 0.0 }
 0x124   :  { %v371_v20 = vadd.f32 %v370_v19, %v340_v13 }
 0x125   :  { %372 = vst [vmem:[#allocation2] sm:$0x1] %v368_v18 }
 0x126   :  { %373 = vst [vmem:[#allocation3] sm:$0x1] %v371_v20 }
 0x12c   :  { %v377_v25 = vld [vmem:[#allocation2] sm:$0x1] }
 0x12d   :  { %v378_v21 = vld [vmem:[#allocation3] sm:$0x1] }
 0x12e   :  { %vm379_vm11 = vcmp.gt.f32.partialorder %v378_v21, 0.0  ;;  %v380_v22 = vmax.f32 %v378_v21, 1.0 }
 0x12f   :  { %v440_v23 = vsel %vm379_vm11, 1.0, %v512_v2 }
 0x130   :  { %498 = vrcp.f32 %v380_v22  ;;  %v387_v16 = vsel %vm386_vm10, %v440_v23, 0.0 }
 0x131   :  { %388 = vadd.xlane.f32.xlu0 %v387_v16 }
 0x13d   :  { %v499_v24 = vpop.eup %498 }
 0x13e   :  { %v382_v26 = vmul.f32 %v499_v24, %v377_v25 }
 0x140   :  { %v383_v27 = vsel %vm379_vm11, %v382_v26, 0.0 }
 0x141   :  { %v397_v28 = vsel %vm386_vm10, %v383_v27, 0.0 }
 0x142   :  { %398 = vadd.xlane.f32.xlu1 %v397_v28 }
 0x1ba   :  { %v389_v29 = vpop.xlane.xlu0 %388 }
 0x1bb   :  { %v390_v30 = vrot.slane %v389_v29, 4 }
 0x1bd   :  { %v391_v31 = vadd.f32 %v390_v30, %v389_v29 }
 0x1bf   :  { %v392_v32 = vrot.slane %v391_v31, 2 }
 0x1c1   :  { %v393_v33 = vadd.f32 %v392_v32, %v391_v31 }
 0x1c3   :  { %v394_v34 = vrot.slane %v393_v33, 1 }
 0x1c5   :  { %v395_v35 = vadd.f32 %v394_v34, %v393_v33 }
 0x1c7   :  { %483 = vpush %v395_v35 }
 0x1cb   :  { %v399_v36 = vpop.xlane.xlu1 %398 }
 0x1cc   :  { %v400_v37 = vrot.slane %v399_v36, 4 }
 0x1ce   :  { %v401_v2 = vadd.f32 %v400_v37, %v399_v36 }
 0x1d0   :  { %v402_v38 = vrot.slane %v401_v2, 2 }
 0x1d2   :  { %v403_v39 = vadd.f32 %v402_v38, %v401_v2 }
 0x1d4   :  { %v404_v40 = vrot.slane %v403_v39, 1 }
 0x1d6   :  { %v405_v41 = vadd.f32 %v404_v40, %v403_v39 }
 0x1d8   :  { %485 = vpush %v405_v41 }
 0x1f8   :  { %s484_s3 = spop %483 }
 0x1f9   :  { %s407_s5 = smax.f32 %s513_s4, %s484_s3 }
 0x1fa   :  { %v408_v42 = vstv %s407_s5 }
 0x1fb   :  { %500 = vrcp.f32 %v408_v42 }
 0x208   :  { %v501_v43 = vpop.eup %500 }
 0x209   :  { %487 = vpush %v501_v43  ;;  %s486_s6 = spop %485 }
 0x23a   :  { %s488_s7 = spop %487 }
 0x23b   :  { %s411_s8 = smul.f32 %s488_s7, %s486_s6 }
 0x23d   :  { %413 = sst [smem:[#allocation4]] %s411_s8 }
 0x23e   :  { %421 = dma.smem_to_hbm %s514_s9, 16, %s604_s2, [#allocation5]  }
 0x23f   :  { %510 = dma.done.wait [#allocation5], 16  }
 0x240   :  { %511 = vsyncadd [#allocation5], 4294967280 }
 0x241   :  { %425 = sfence }
 0x242   :  { %426 = vsyncpa [#allocation5], 1 }

</bundles_post_ra>
